<compile_context>
chip_gen: v5e
topology: v5e:2x2
jax: 0.10.0
libtpu: 0.0.40
codegen_flags: <defaults>
</compile_context>

<pallas_src>
import jax
import jax.numpy as jnp
from jax.experimental import pallas as pl
from jax.experimental.pallas import tpu as pltpu

_LANE = 128


def _round_up(n: int, m: int) -> int:
    return ((n + m - 1) // m) * m


def policy_kernel(ab_ref, x_ref, w1_ref, b1_ref, w2_ref, b2_ref, o_ref):
    # fc1 + ReLU: MXU matmul with f32 accumulation; bias add / ReLU in f32.
    h = jnp.dot(x_ref[...], w1_ref[...],
                preferred_element_type=jnp.float32) + b1_ref[...]
    h = jnp.maximum(h, 0.0)
    # fc2 + tanh * action_bound (scale read from SMEM scalar each step).
    a = jnp.dot(h.astype(w2_ref.dtype), w2_ref[...],
                preferred_element_type=jnp.float32) + b2_ref[...]
    o_ref[...] = (jnp.tanh(a) * ab_ref[0]).astype(o_ref.dtype)


def prepare_params(w1, b1, w2, b2, *, use_bf16: bool = True):
    """One-time param prep (hoisted out of the per-call hot path).

    Pads hidden/action dims to 128-lane multiples (lane-dense activations, no
    masked partial stores) and optionally pre-casts matmul weights to bf16.
    Padding is mathematically inert: zero weight columns + zero bias ->
    relu(0)=0 hidden pad; padded action columns are sliced off after the call.
    Weights are [in, out] (transposed vs. torch); biases [out] or [1, out].
    """
    w1 = jnp.asarray(w1, jnp.float32)
    b1 = jnp.asarray(b1, jnp.float32).reshape(1, -1)
    w2 = jnp.asarray(w2, jnp.float32)
    b2 = jnp.asarray(b2, jnp.float32).reshape(1, -1)
    S, H = w1.shape
    A = w2.shape[1]
    Hp, Ap = _round_up(H, _LANE), _round_up(A, _LANE)

    w1p = jnp.pad(w1, ((0, 0), (0, Hp - H)))
    b1p = jnp.pad(b1, ((0, 0), (0, Hp - H)))
    w2p = jnp.pad(w2, ((0, Hp - H), (0, Ap - A)))
    b2p = jnp.pad(b2, ((0, 0), (0, Ap - A)))

    mm_dtype = jnp.bfloat16 if use_bf16 else jnp.float32
    return dict(w1=w1p.astype(mm_dtype), b1=b1p,
                w2=w2p.astype(mm_dtype), b2=b2p,
                state_dim=S, action_dim=A, use_bf16=use_bf16)


def policy_net_forward(x, params, action_bound, *,
                       block_batch: int = 2048, min_tiles: int = 1):
    """x: [B, state_dim] -> [B, action_dim] f32.

    `params` comes from prepare_params().  Set min_tiles=2 on v7x so the
    "parallel" batch grid axis shards across both TensorCores.
    """
    w1p, b1p, w2p, b2p = params["w1"], params["b1"], params["w2"], params["b2"]
    use_bf16 = params["use_bf16"]
    A = params["action_dim"]
    S, Hp = w1p.shape
    Ap = w2p.shape[1]

    in_dtype = jnp.bfloat16 if use_bf16 else jnp.float32
    out_dtype = jnp.bfloat16 if use_bf16 else jnp.float32
    x = jnp.asarray(x, in_dtype)
    B = x.shape[0]
    assert x.shape[1] == S, "state_dim mismatch"

    # ---- batch tiling ----------------------------------------------------
    # bf16 packs 2 rows per sublane -> native (16,128) tiles; f32 -> (8,128).
    granule = 16 if use_bf16 else 8
    in_b = 2 if use_bf16 else 4
    out_b = 2 if use_bf16 else 4

    # VMEM budget: double-buffered x/out tiles + resident weights + f32 h slack
    # must stay under the smallest scoped default (16 MiB on v5e); also keeps
    # v7x (64 MiB physical) comfortable without an explicit vmem_limit.
    weight_bytes = ((w1p.size + w2p.size) * in_b + (b1p.size + b2p.size) * 4)
    per_row_bytes = 2 * (S * in_b + Ap * out_b) + 8 * Hp
    budget = 12 * 1024 * 1024
    tb_cap = max(granule,
                 ((budget - weight_bytes) // per_row_bytes) // granule * granule)

    block_batch = max(granule, min(block_batch, tb_cap))
    # Balanced tiles: padding is <= one sublane group per tile.
    num_tiles = max(pl.cdiv(B, block_batch), min_tiles)
    num_tiles = min(num_tiles, pl.cdiv(B, granule))
    TB = min(_round_up(pl.cdiv(B, num_tiles), granule), tb_cap)
    num_tiles = pl.cdiv(B, TB)
    Bp = num_tiles * TB
    xp = jnp.pad(x, ((0, Bp - B), (0, 0))) if Bp != B else x

    ab = jnp.asarray(action_bound, jnp.float32).reshape(1)

    cost = pl.CostEstimate(
        flops=2 * Bp * (S * Hp + Hp * Ap),
        transcendentals=Bp * Ap,
        bytes_accessed=Bp * S * in_b + Bp * Ap * out_b + weight_bytes)

    grid_spec = pltpu.PrefetchScalarGridSpec(
        num_scalar_prefetch=0,
        grid=(num_tiles,),
        in_specs=[
            pl.BlockSpec(memory_space=pltpu.MemorySpace.SMEM),  # action_bound
            pl.BlockSpec((TB, S), lambda i: (i, 0)),            # x tile
            pl.BlockSpec((S, Hp), lambda i: (0, 0)),            # w1 (resident)
            pl.BlockSpec((1, Hp), lambda i: (0, 0)),            # b1 (resident)
            pl.BlockSpec((Hp, Ap), lambda i: (0, 0)),           # w2 (resident)
            pl.BlockSpec((1, Ap), lambda i: (0, 0)),            # b2 (resident)
        ],
        out_specs=pl.BlockSpec((TB, Ap), lambda i: (i, 0)),
    )

    out = pl.pallas_call(
        policy_kernel,
        out_shape=jax.ShapeDtypeStruct((Bp, Ap), out_dtype),
        grid_spec=grid_spec,
        compiler_params=pltpu.CompilerParams(
            dimension_semantics=("parallel",)),
        cost_estimate=cost,
    )(ab, xp, w1p, b1p, w2p, b2p)

    return out[:B, :A].astype(jnp.float32)


def init_params(key, state_dim, hidden_dim, action_dim):
    """torch.nn.Linear-style init (uniform +-1/sqrt(fan_in)); [in, out] layout."""
    k1, k2, k3, k4 = jax.random.split(key, 4)
    bound1 = 1.0 / jnp.sqrt(state_dim)
    bound2 = 1.0 / jnp.sqrt(hidden_dim)
    w1 = jax.random.uniform(k1, (state_dim, hidden_dim), jnp.float32,
                            -bound1, bound1)
    b1 = jax.random.uniform(k2, (1, hidden_dim), jnp.float32, -bound1, bound1)
    w2 = jax.random.uniform(k3, (hidden_dim, action_dim), jnp.float32,
                            -bound2, bound2)
    b2 = jax.random.uniform(k4, (1, action_dim), jnp.float32, -bound2, bound2)
    return w1, b1, w2, b2


def reference_forward(x, w1, b1, w2, b2, action_bound):
    h = jnp.maximum(x @ w1 + b1, 0.0)
    return jnp.tanh(h @ w2 + b2) * action_bound


if __name__ == "__main__":
    # Small shapes consistent with the module's forward (Linear -> Linear).
    batch, state_dim, hidden_dim, action_dim = 8, 16, 32, 8
    action_bound = 2.0

    key = jax.random.PRNGKey(0)
    kx, kp, kb = jax.random.split(key, 3)
    x = jax.random.normal(kx, (batch, state_dim), jnp.float32)
    w1, b1, w2, b2 = init_params(kp, state_dim, hidden_dim, action_dim)

    # f32 path at the reference shape (strict tolerance).
    params_f32 = prepare_params(w1, b1, w2, b2, use_bf16=False)
    out = jax.block_until_ready(policy_net_forward(x, params_f32, action_bound))
    ref = reference_forward(x, w1, b1, w2, b2, action_bound)
    assert out.shape == (batch, action_dim)
    assert jnp.allclose(out, ref, atol=1e-4, rtol=1e-4), "f32 mismatch"

    # Larger, non-aligned batch with min_tiles=2 (v7x dual-TC path): exercises
    # the balanced multi-tile grid + minimal pad/slice path.  f32 strict.
    xb = jax.random.normal(kb, (300, state_dim), jnp.float32)
    out_big = jax.block_until_ready(
        policy_net_forward(xb, params_f32, action_bound, min_tiles=2))
    ref_big = reference_forward(xb, w1, b1, w2, b2, action_bound)
    assert out_big.shape == (300, action_dim)
    assert jnp.allclose(out_big, ref_big, atol=1e-4, rtol=1e-4), "tiled mismatch"

    # Default bf16 matmul-input / bf16 padded-output path, loose tolerance.
    params_bf16 = prepare_params(w1, b1, w2, b2, use_bf16=True)
    out_bf16 = jax.block_until_ready(
        policy_net_forward(xb, params_bf16, action_bound, min_tiles=2))
    assert out_bf16.shape == (300, action_dim)
    assert jnp.allclose(out_bf16, ref_big, atol=5e-2, rtol=5e-2), "bf16 mismatch"

    print("KERNEL_OK")
</pallas_src>

<mosaic_0001>
module attributes {stable_mosaic.version = 11 : i64} {
  func.func @policy_kernel(%arg0: i32, %arg1: memref<1xf32, #tpu.memory_space<smem>>, %arg2: memref<8x16xf32, #tpu.memory_space<vmem>>, %arg3: memref<16x128xf32, #tpu.memory_space<vmem>>, %arg4: memref<1x128xf32, #tpu.memory_space<vmem>>, %arg5: memref<128x128xf32, #tpu.memory_space<vmem>>, %arg6: memref<1x128xf32, #tpu.memory_space<vmem>>, %arg7: memref<8x128xf32, #tpu.memory_space<vmem>>) attributes {dimension_semantics = [#tpu.dimension_semantics<parallel>], iteration_bounds = array<i64: 1>, scalar_prefetch = 0 : i64, scratch_operands = 0 : i64, tpu.core_type = #tpu.core_type<tc>, window_params = [{transform_indices = @transform_0, window_bounds = array<i64: 1>}, {transform_indices = @transform_1, window_bounds = array<i64: 8, 16>}, {pipeline_mode = #tpu.pipeline_mode<synchronous>, transform_indices = @transform_2, window_bounds = array<i64: 16, 128>}, {pipeline_mode = #tpu.pipeline_mode<synchronous>, transform_indices = @transform_3, window_bounds = array<i64: 1, 128>}, {pipeline_mode = #tpu.pipeline_mode<synchronous>, transform_indices = @transform_4, window_bounds = array<i64: 128, 128>}, {pipeline_mode = #tpu.pipeline_mode<synchronous>, transform_indices = @transform_5, window_bounds = array<i64: 1, 128>}, {transform_indices = @transform_6, window_bounds = array<i64: 8, 128>}]} {
    %c0 = arith.constant 0 : index
    %c0_0 = arith.constant 0 : index
    %0 = vector.load %arg2[%c0, %c0_0] : memref<8x16xf32, #tpu.memory_space<vmem>>, vector<8x16xf32>
    %c0_1 = arith.constant 0 : index
    %c0_2 = arith.constant 0 : index
    %1 = vector.load %arg3[%c0_1, %c0_2] : memref<16x128xf32, #tpu.memory_space<vmem>>, vector<16x128xf32>
    %cst = arith.constant dense<0.000000e+00> : vector<8x128xf32>
    %2 = tpu.matmul %0, %1, %cst {dimension_numbers = #tpu.dot_dimension_numbers<[1], [0], [0], [1], [0, 0, 1, 1], [], []>} : vector<8x16xf32>, vector<16x128xf32>, vector<8x128xf32> -> vector<8x128xf32>
    %c0_3 = arith.constant 0 : index
    %c0_4 = arith.constant 0 : index
    %3 = vector.load %arg4[%c0_3, %c0_4] : memref<1x128xf32, #tpu.memory_space<vmem>>, vector<1x128xf32>
    %4 = vector.broadcast %3 : vector<1x128xf32> to vector<8x128xf32>
    %5 = arith.addf %2, %4 : vector<8x128xf32>
    %cst_5 = arith.constant 0.000000e+00 : f32
    %6 = vector.broadcast %cst_5 : f32 to vector<8x128xf32>
    %7 = arith.maximumf %5, %6 : vector<8x128xf32>
    %c0_6 = arith.constant 0 : index
    %c0_7 = arith.constant 0 : index
    %8 = vector.load %arg5[%c0_6, %c0_7] : memref<128x128xf32, #tpu.memory_space<vmem>>, vector<128x128xf32>
    %cst_8 = arith.constant dense<0.000000e+00> : vector<8x128xf32>
    %9 = tpu.matmul %7, %8, %cst_8 {dimension_numbers = #tpu.dot_dimension_numbers<[1], [0], [0], [1], [0, 0, 1, 1], [], []>} : vector<8x128xf32>, vector<128x128xf32>, vector<8x128xf32> -> vector<8x128xf32>
    %c0_9 = arith.constant 0 : index
    %c0_10 = arith.constant 0 : index
    %10 = vector.load %arg6[%c0_9, %c0_10] : memref<1x128xf32, #tpu.memory_space<vmem>>, vector<1x128xf32>
    %11 = vector.broadcast %10 : vector<1x128xf32> to vector<8x128xf32>
    %12 = arith.addf %9, %11 : vector<8x128xf32>
    %13 = math.tanh %12 : vector<8x128xf32>
    %c0_11 = arith.constant 0 : index
    %14 = memref.load %arg1[%c0_11] : memref<1xf32, #tpu.memory_space<smem>>
    %15 = vector.broadcast %14 : f32 to vector<8x128xf32>
    %16 = arith.mulf %13, %15 : vector<8x128xf32>
    %c0_12 = arith.constant 0 : index
    %c0_13 = arith.constant 0 : index
    %17 = vector.load %arg7[%c0_12, %c0_13] : memref<8x128xf32, #tpu.memory_space<vmem>>, vector<8x128xf32>
    tpu.vector_store %arg7[%c0_12, %c0_13], %16 {strides = array<i32>} : memref<8x128xf32, #tpu.memory_space<vmem>>, vector<8x128xf32>,
    return
  }
  func.func @transform_0(%arg0: i32) -> i32 {
    %c0_i32 = arith.constant 0 : i32
    %c0_i32_0 = arith.constant 0 : i32
    return %c0_i32 : i32
  }
  func.func @transform_1(%arg0: i32) -> (i32, i32) {
    %c0_i32 = arith.constant 0 : i32
    %c0_i32_0 = arith.constant 0 : i32
    return %arg0, %c0_i32 : i32, i32
  }
  func.func @transform_2(%arg0: i32) -> (i32, i32) {
    %c0_i32 = arith.constant 0 : i32
    %c0_i32_0 = arith.constant 0 : i32
    %c0_i32_1 = arith.constant 0 : i32
    return %c0_i32, %c0_i32_0 : i32, i32
  }
  func.func @transform_3(%arg0: i32) -> (i32, i32) {
    %c0_i32 = arith.constant 0 : i32
    %c0_i32_0 = arith.constant 0 : i32
    %c0_i32_1 = arith.constant 0 : i32
    return %c0_i32, %c0_i32_0 : i32, i32
  }
  func.func @transform_4(%arg0: i32) -> (i32, i32) {
    %c0_i32 = arith.constant 0 : i32
    %c0_i32_0 = arith.constant 0 : i32
    %c0_i32_1 = arith.constant 0 : i32
    return %c0_i32, %c0_i32_0 : i32, i32
  }
  func.func @transform_5(%arg0: i32) -> (i32, i32) {
    %c0_i32 = arith.constant 0 : i32
    %c0_i32_0 = arith.constant 0 : i32
    %c0_i32_1 = arith.constant 0 : i32
    return %c0_i32, %c0_i32_0 : i32, i32
  }
  func.func @transform_6(%arg0: i32) -> (i32, i32) {
    %c0_i32 = arith.constant 0 : i32
    %c0_i32_0 = arith.constant 0 : i32
    return %arg0, %c0_i32 : i32, i32
  }
}

</mosaic_0001>

<bundles_post_ra>
// kernel: tpu_custom_call.1
= control target key start
LH: loop header
LB: loop body
LE: loop exit
PB: predicated region body
PF: predicated region fallthrough
CT: control target
= control target key end

     0   :  { %12 = vsyncpa [#allocation4], 0  ;;  %s340_s0 = inlined_call_operand.<no memory space> [shape: f32[1], index: 0, kind: input, shape index: {}]   ;;  %s341_s1 = inlined_call_operand.hbm [shape: f32[8,16], index: 1, kind: input, shape index: {}]   ;;  %s342_s2 = inlined_call_operand.hbm [shape: f32[16,128], index: 2, kind: input, shape index: {}]   ;;  %s343_s3 = inlined_call_operand.vmem [shape: f32[1,128], index: 3, kind: input, shape index: {}]   ;;  %s344_s4 = inlined_call_operand.hbm [shape: f32[128,128], index: 4, kind: input, shape index: {}]   ;;  %s345_s5 = inlined_call_operand.vmem [shape: f32[1,128], index: 5, kind: input, shape index: {}]   ;;  %s346_s6 = inlined_call_operand.hbm [shape: f32[8,128], index: 6, kind: output, shape index: {}]  }
   0x1   :  { %13 = vsyncpa [#allocation7], 0  ;;  %s32_s23 = sshll.u32 %s342_s2, 4  ;;  %s33_s23 = int_to_ptr.hbm [resolvable:$true] %s32_s23 }
   0x2   :  { %14 = vsyncpa [#allocation5], 0  ;;  %s278_s24 = smov [#allocation6]   ;;  %s22_s28 = sshll.u32 %s341_s1, 4  ;;  %s23_s28 = int_to_ptr.hbm [resolvable:$true] %s22_s28 }
   0x3   :  { %s34_s25 = sshll.u32 %s278_s24, 4  ;;  %s279_s29 = smov 128   ;;  %s35_s25 = int_to_ptr.vmem [resolvable:$true] %s34_s25 }
   0x4   :  { %s280_s30 = smov 8   ;;  %s281_s7 = smov [#allocation3]  }
   0x5   :  { %40 = dma.hbm_to_vmem [thread:$0]  %s33_s23, 256, %s35_s25, [#allocation7], %s279_s29, %s279_s29, %s280_s30  }
   0x6   :  { %s24_s8 = sshll.u32 %s281_s7, 4  ;;  %s47_s11 = sshll.u32 %s344_s4, 4  ;;  %s25_s8 = int_to_ptr.vmem [resolvable:$true] %s24_s8  ;;  %s48_s11 = int_to_ptr.hbm [resolvable:$true] %s47_s11 }
   0x7   :  { %27 = dma.hbm_to_vmem [thread:$0]  %s23_s28, 128, %s25_s8, [#allocation4]  }
   0x8   :  { %s282_s2 = smov [#allocation8]  }
   0x9   :  { %s49_s12 = sshll.u32 %s282_s2, 4  ;;  %s50_s12 = int_to_ptr.vmem [resolvable:$true] %s49_s12 }
   0xa   :  { %55 = dma.hbm_to_vmem [thread:$0]  %s48_s11, 2048, %s50_s12, [#allocation7], %s279_s29, %s279_s29, %s280_s30  }
   0xb   :  { %272 = dma.done.wait [#allocation4], 128  }
   0xc   :  { %273 = vsyncadd [#allocation4], 4294967168 }
   0xd   :  { %274 = dma.done.wait [#allocation7], 2304  }
   0xe   :  { %275 = vsyncadd [#allocation7], 4294964992  ;;  %v72_v0 = vld [vmem:[#allocation6 + $0x8] sm:$0xff]  ;;  %v71_v1 = vld [vmem:[#allocation6] sm:$0xff]  ;;  %vm77_vm0 = vcmask 130048   ;;  %v144_v26 = vstv %s340_s0  ;;  %s283_s17 = smov [#allocation9]  }
   0xf   :  { %95 = vmatpush.msra.mxu0 %v72_v0  ;;  %v70_v2 = vld [vmem:[#allocation3] sm:$0xff]  ;;  %v117_v3 = vld [vmem:[#allocation8 + $0x78] sm:$0xff]  ;;  %v116_v4 = vld [vmem:[#allocation8 + $0x70] sm:$0xff]  ;;  %s152_s18 = sshll.u32 %s283_s17, 4  ;;  %s153_s18 = int_to_ptr.vmem [resolvable:$true] %s152_s18 }
  0x10   :  { %122 = vmatpush.msra.mxu1 %v117_v3  ;;  %v115_v5 = vld [vmem:[#allocation8 + $0x68] sm:$0xff]  ;;  %v114_v6 = vld [vmem:[#allocation8 + $0x60] sm:$0xff]  ;;  %v113_v7 = vld [vmem:[#allocation8 + $0x58] sm:$0xff] }
  0x11   :  { %96 = vmatpush.msra.mxu0 %v71_v1  ;;  %v112_v8 = vld [vmem:[#allocation8 + $0x50] sm:$0xff]  ;;  %v111_v9 = vld [vmem:[#allocation8 + $0x48] sm:$0xff]  ;;  %v110_v10 = vld [vmem:[#allocation8 + $0x40] sm:$0xff] }
  0x12   :  { %165 = vmatmul.msk.f32.vlgmr.msra.gmra.mxu0 %vm77_vm0, %v70_v2  ;;  %123 = vmatpush.msra.mxu1 %v116_v4  ;;  %v109_v11 = vld [vmem:[#allocation8 + $0x38] sm:$0xff]  ;;  %v108_v12 = vld [vmem:[#allocation8 + $0x30] sm:$0xff]  ;;  %v107_v13 = vld [vmem:[#allocation8 + $0x28] sm:$0xff] }
  0x13   :  { %v106_v14 = vld [vmem:[#allocation8 + $0x20] sm:$0xff]  ;;  %v105_v15 = vld [vmem:[#allocation8 + $0x18] sm:$0xff]  ;;  %v104_v16 = vld [vmem:[#allocation8 + $0x10] sm:$0xff] }
  0x14   :  { %124 = vmatpush.msra.mxu1 %v115_v5  ;;  %v103_v17 = vld [vmem:[#allocation8 + $0x8] sm:$0xff]  ;;  %v102_v18 = vld [vmem:[#allocation8] sm:$0xff] }
  0x15   :  { %v172_v19 = vld [vmem:[%s343_s3] ss:$0 sm:$0xff]  ;;  %s154_s3 = sshll.u32 %s346_s6, 4  ;;  %s155_s3 = int_to_ptr.hbm [resolvable:$true] %s154_s3 }
  0x16   :  { %125 = vmatpush.msra.mxu1 %v114_v6  ;;  %v173_v23 = vld [vmem:[%s345_s5] ss:$0 sm:$0xff] }
  0x18   :  { %126 = vmatpush.msra.mxu1 %v113_v7 }
  0x1a   :  { %127 = vmatpush.msra.mxu1 %v112_v8 }
  0x1c   :  { %128 = vmatpush.msra.mxu1 %v111_v9 }
  0x1e   :  { %129 = vmatpush.msra.mxu1 %v110_v10 }
  0x20   :  { %130 = vmatpush.msra.mxu1 %v109_v11 }
  0x22   :  { %131 = vmatpush.msra.mxu1 %v108_v12 }
  0x24   :  { %132 = vmatpush.msra.mxu1 %v107_v13 }
  0x26   :  { %133 = vmatpush.msra.mxu1 %v106_v14 }
  0x28   :  { %134 = vmatpush.msra.mxu1 %v105_v15 }
  0x2a   :  { %135 = vmatpush.msra.mxu1 %v104_v16 }
  0x2c   :  { %136 = vmatpush.msra.mxu1 %v103_v17 }
  0x2e   :  { %137 = vmatpush.msra.mxu1 %v102_v18 }
  0x8f   :  { %v98_v20 = vpop.f32.mrf.mxu0 }
  0x90   :  { %v99_v21 = vadd.f32 %v172_v19, %v98_v20 }
  0x92   :  { %v101_v22 = vmax.f32 %v99_v21, 0.0 }
  0x94   :  { %138 = vmatmul.f32.vlgmr.msra.gmra.mxu1 %v101_v22 }
 0x111   :  { %v139_v24 = vpop.f32.mrf.mxu1 }
 0x112   :  { %v140_v25 = vadd.f32 %v173_v23, %v139_v24 }
 0x114   :  { %174 = vtanh.f32 %v140_v25 }
 0x11a   :  { %v175_v27 = vpop.eup %174 }
 0x11b   :  { %v145_v28 = vmul.f32 %v175_v27, %v144_v26 }
 0x11d   :  { %146 = vst [vmem:[#allocation9] sm:$0xff] %v145_v28 }
 0x11e   :  { %157 = dma.vmem_to_hbm [thread:$0]  %s153_s18, 128, %s155_s3, [#allocation5]  }
 0x11f   :  { %276 = dma.done.wait [#allocation5], 128  }
 0x120   :  { %277 = vsyncadd [#allocation5], 4294967168 }
 0x121   :  { %162 = vsyncpa [#allocation4], 1 }
 0x122   :  { %163 = vsyncpa [#allocation7], 1 }
 0x123   :  { %164 = vsyncpa [#allocation5], 1 }

</bundles_post_ra>
